<compile_context>
chip_gen: v5e
topology: v5e:2x2
jax: 0.10.0
libtpu: 0.0.40
codegen_flags: <defaults>
</compile_context>

<pallas_src>
import functools

import jax
import jax.numpy as jnp
import numpy as np
from jax.experimental import pallas as pl
from jax.experimental.pallas import tpu as pltpu

S_DIM = 16      # state dim
A_DIM = 4       # action dim
BATCH = 8       # small batch

# w512 pack rows: [p1|v1] fused (128) | p2 (256) | v2 (256) | pol/val head (16)
W512_ROWS = 128 + 256 + 256 + 16


def _softplus(z):
    # numerically-stable softplus: max(z,0) + log1p(exp(-|z|))
    return jnp.maximum(z, 0.0) + jnp.log1p(jnp.exp(-jnp.abs(z)))


def _mm(a, b):
    """a @ b on the MXU, f32 accumulation."""
    return jnp.dot(a, b, preferred_element_type=jnp.float32)


def _mm_t(a, b_t):
    """a @ b_t.T where b_t is stored lane-dense as (out, in)."""
    return jax.lax.dot_general(a, b_t, (((1,), (1,)), ((), ())),
                               preferred_element_type=jnp.float32)


def net_kernel(x_ref, w128_ref, b_ref, w512_hbm_ref, out_ref,
               w512_vmem, dma_sem, *, s_dim, a_dim):
    B = x_ref.shape[0]

    # Kick off the big (~1.3 MB) w512 stream immediately; it overlaps with the
    # trunk / mu-sigma work below, which only needs the small w128 + bias packs.
    w512_copy = pltpu.make_async_copy(w512_hbm_ref, w512_vmem, dma_sem)
    w512_copy.start()

    x = x_ref[...]                                    # (B, s_dim)
    bias = b_ref[...]                                 # (8, 512), loaded once
    b_fold   = bias[0:1, 0:128]                       # folded trunk bias
    b_pv1    = bias[1:2, :]                           # [b_p1 | b_v1]
    b_p2     = bias[2:3, :]
    b_v2     = bias[3:4, :]
    b_head16 = bias[4:5, 0:16]                        # b_pol @ 0:a, b_val @ a
    b_musg16 = bias[5:6, 0:16]                        # b_mu @ 8:8+a, b_sg @ 8+a:8+2a

    w_fold  = w128_ref[0:s_dim, :]                    # (s_dim, 128) = cli1 @ cli2 folded
    w_musgT = w128_ref[s_dim:s_dim + 16, :]           # (16, 128): rows 8:8+2a = [mu|sg]^T

    # ---- folded trunk (no activation between cli1 and cli2 in the reference) --
    cli = _mm(x, w_fold) + b_fold                     # (B, 128)

    # ---- mu/sigma head: independent of w512, hides under its DMA --------------
    z = _mm_t(cli, w_musgT) + b_musg16                # (B,16): mu_raw @ 8:8+a, sg_raw @ 8+a:8+2a
    lane16 = jax.lax.broadcasted_iota(jnp.int32, (B, 16), 1)
    musig = jnp.where(lane16 < 8 + a_dim, 2.0 * jnp.tanh(z), _softplus(z) + 1e-5)

    t = jnp.tanh(cli)                                 # shared tanh for policy & value paths

    # ---- policy/value path needs w512: DMA has been running behind the trunk --
    w512_copy.wait()
    w_pv1   = w512_vmem[0:128, :]                     # (128, 512): cols [p1 | v1]
    w_p2    = w512_vmem[128:384, :]                   # (256, 512)
    w_v2    = w512_vmem[384:640, :]                   # (256, 512)
    w_headT = w512_vmem[640:656, :]                   # (16, 512): rows 0:a = pol^T, row a = val^T

    pv = _mm(t, w_pv1) + b_pv1                        # (B, 512): [policy1 | value1]
    p1 = pv[:, 0:256]
    v1 = pv[:, 256:512]
    tp = jnp.tanh(_mm(p1, w_p2) + b_p2)               # (B, 512)
    tv = jnp.tanh(_mm(v1, w_v2) + b_v2)               # (B, 512)

    # ---- fused pol/val head: one matmul over the sublane-stacked [tp; tv] -----
    tpv = jnp.concatenate([tp, tv], axis=0)           # (2B, 512)
    av = _mm_t(tpv, w_headT) + b_head16               # (2B, 16)
    avsel = jnp.where(lane16 < a_dim, av[0:B, :], av[B:2 * B, :])
    # lanes 0:a = actions, lane a = values, lanes a+1:16 are exactly zero
    # (zero head rows + zero bias), so no extra masking is needed.

    # single (B, 16) store: actions 0:a, values a, mu 8:8+a, sigma 8+a:8+2a
    out_ref[...] = jnp.where(lane16 < 8, avsel, musig)


def init_params(key, s_dim, a_dim):
    """normal_(mean=0, std=0.1) weights, constant 0.1 biases (matches set_init)."""
    shapes = {
        "cli1": (s_dim, 128), "cli2": (128, 128),
        "p1": (128, 256), "p2": (256, 512), "pol": (512, a_dim),
        "v1": (128, 256), "v2": (256, 512), "val": (512, 1),
        "mu": (128, a_dim), "sg": (128, a_dim),
    }
    params = {}
    for k, (name, (din, dout)) in zip(jax.random.split(key, len(shapes)), shapes.items()):
        params["w_" + name] = 0.1 * jax.random.normal(k, (din, dout), jnp.float32)
        params["b_" + name] = jnp.full((dout,), 0.1, jnp.float32)
    return params


def pack_params(params, s_dim, a_dim):
    """Pack the 20 tensors into 3 lane-dense buffers (done once, outside the kernel).

    W128 (s_dim+16, 128): [0:s) folded trunk (cli1 @ cli2) | [s:s+16) mu/sigma
        head transposed, placed at block rows 8:8+2a so the head matmul lands
        mu at output lanes 8:8+a and sigma at 8+a:8+2a.
    W512 (656, 512): [0:128) [p1|v1] fused | [128:384) p2 | [384:640) v2 |
        [640:656) pol/val head transposed (block row j -> output lane j).
    BIAS (8, 512): rows = folded trunk, [p1|v1], p2, v2, pol/val head (16 lanes),
        mu/sigma head (16 lanes), 2 spare rows for sublane alignment.
    """
    assert s_dim % 8 == 0 and 8 + 2 * a_dim <= 16 and a_dim + 1 <= 8
    f32 = jnp.float32

    # trunk fold: no activation between cli1 and cli2 in the reference forward.
    w_fold = params["w_cli1"] @ params["w_cli2"]                      # (s_dim, 128)
    b_fold = params["b_cli1"] @ params["w_cli2"] + params["b_cli2"]   # (128,)

    w128 = jnp.zeros((s_dim + 16, 128), f32)
    w128 = w128.at[0:s_dim].set(w_fold)
    mo = s_dim + 8
    w128 = w128.at[mo:mo + a_dim].set(params["w_mu"].T)
    w128 = w128.at[mo + a_dim:mo + 2 * a_dim].set(params["w_sg"].T)

    w512 = jnp.zeros((W512_ROWS, 512), f32)
    w512 = w512.at[0:128, 0:256].set(params["w_p1"])
    w512 = w512.at[0:128, 256:512].set(params["w_v1"])
    w512 = w512.at[128:384].set(params["w_p2"])
    w512 = w512.at[384:640].set(params["w_v2"])
    w512 = w512.at[640:640 + a_dim].set(params["w_pol"].T)
    w512 = w512.at[640 + a_dim].set(params["w_val"][:, 0])

    bias = jnp.zeros((8, 512), f32)
    bias = bias.at[0, 0:128].set(b_fold)
    bias = bias.at[1, 0:256].set(params["b_p1"])
    bias = bias.at[1, 256:512].set(params["b_v1"])
    bias = bias.at[2].set(params["b_p2"])
    bias = bias.at[3].set(params["b_v2"])
    bias = bias.at[4, 0:a_dim].set(params["b_pol"])
    bias = bias.at[4, a_dim:a_dim + 1].set(params["b_val"])
    bias = bias.at[5, 8:8 + a_dim].set(params["b_mu"])
    bias = bias.at[5, 8 + a_dim:8 + 2 * a_dim].set(params["b_sg"])
    return w128, w512, bias


@functools.partial(jax.jit, static_argnames=("s_dim", "a_dim"))
def net_forward(x, w128, w512, bias, *, s_dim, a_dim):
    B = x.shape[0]
    vmem = pl.BlockSpec(memory_space=pltpu.MemorySpace.VMEM)
    packed = pl.pallas_call(
        functools.partial(net_kernel, s_dim=s_dim, a_dim=a_dim),
        out_shape=jax.ShapeDtypeStruct((B, 16), jnp.float32),
        in_specs=[vmem, vmem, vmem, pl.BlockSpec(memory_space=pl.ANY)],
        out_specs=vmem,
        scratch_shapes=[pltpu.VMEM((W512_ROWS, 512), jnp.float32),
                        pltpu.SemaphoreType.DMA(())],
        cost_estimate=pl.CostEstimate(flops=5_600_000, transcendentals=10_000,
                                      bytes_accessed=1_400_000),
    )(x, w128, bias, w512)
    # wrapper-side layout plumbing: slice the small lane-dense output slab
    actions = packed[:, 0:a_dim]
    values  = packed[:, a_dim:a_dim + 1]
    mu      = packed[:, 8:8 + a_dim]
    sigma   = packed[:, 8 + a_dim:8 + 2 * a_dim]
    return actions, values, mu, sigma


def net_forward_ref(x, p):
    """Pure-JAX reference for correctness checking (mirrors the PyTorch forward)."""
    lin = lambda h, w, b: h @ p[w] + p[b]
    cli = lin(lin(x, "w_cli1", "b_cli1"), "w_cli2", "b_cli2")
    pp = jnp.tanh(cli)
    pp = jnp.tanh(lin(lin(pp, "w_p1", "b_p1"), "w_p2", "b_p2"))
    actions = lin(pp, "w_pol", "b_pol")
    mu = 2.0 * jnp.tanh(lin(cli, "w_mu", "b_mu"))
    sigma = jax.nn.softplus(lin(cli, "w_sg", "b_sg")) + 1e-5
    v = jnp.tanh(cli)
    v = jnp.tanh(lin(lin(v, "w_v1", "b_v1"), "w_v2", "b_v2"))
    values = lin(v, "w_val", "b_val")
    return actions, values, mu, sigma


if __name__ == "__main__":
    key = jax.random.PRNGKey(0)
    k_param, k_x = jax.random.split(key)
    params = init_params(k_param, S_DIM, A_DIM)
    w128, w512, bias = pack_params(params, S_DIM, A_DIM)
    x = jax.random.normal(k_x, (BATCH, S_DIM), jnp.float32)

    outs = net_forward(x, w128, w512, bias, s_dim=S_DIM, a_dim=A_DIM)
    outs = jax.block_until_ready(outs)

    refs = net_forward_ref(x, params)
    for o, r in zip(outs, refs):
        np.testing.assert_allclose(np.asarray(o), np.asarray(r), rtol=1e-4, atol=1e-4)

    print("KERNEL_OK")
</pallas_src>

<mosaic_0001>
module attributes {stable_mosaic.version = 11 : i64} {
  func.func @net_kernel(%arg0: memref<8x16xf32, #tpu.memory_space<vmem>>, %arg1: memref<32x128xf32, #tpu.memory_space<vmem>>, %arg2: memref<8x512xf32, #tpu.memory_space<vmem>>, %arg3: memref<656x512xf32, #tpu.memory_space<any>>, %arg4: memref<8x16xf32, #tpu.memory_space<vmem>>, %arg5: memref<656x512xf32, #tpu.memory_space<vmem>>, %arg6: memref<!tpu.dma_semaphore, #tpu.memory_space<semaphore_mem>>) attributes {dimension_semantics = [], scalar_prefetch = 0 : i64, scratch_operands = 2 : i64, tpu.core_type = #tpu.core_type<tc>} {
    tpu.enqueue_dma source(%arg3 : memref<656x512xf32, #tpu.memory_space<any>>) target(%arg5 : memref<656x512xf32, #tpu.memory_space<vmem>>) target_semaphore(%arg6 : memref<!tpu.dma_semaphore, #tpu.memory_space<semaphore_mem>>)
    %c0 = arith.constant 0 : index
    %c0_0 = arith.constant 0 : index
    %0 = vector.load %arg0[%c0, %c0_0] : memref<8x16xf32, #tpu.memory_space<vmem>>, vector<8x16xf32>
    %c0_1 = arith.constant 0 : index
    %c0_2 = arith.constant 0 : index
    %1 = vector.load %arg2[%c0_1, %c0_2] : memref<8x512xf32, #tpu.memory_space<vmem>>, vector<8x512xf32>
    %2 = vector.extract_strided_slice %1 {offsets = [0, 0], sizes = [1, 128], strides = [1, 1]} : vector<8x512xf32> to vector<1x128xf32>
    %3 = vector.extract_strided_slice %1 {offsets = [1, 0], sizes = [1, 512], strides = [1, 1]} : vector<8x512xf32> to vector<1x512xf32>
    %4 = vector.extract_strided_slice %1 {offsets = [2, 0], sizes = [1, 512], strides = [1, 1]} : vector<8x512xf32> to vector<1x512xf32>
    %5 = vector.extract_strided_slice %1 {offsets = [3, 0], sizes = [1, 512], strides = [1, 1]} : vector<8x512xf32> to vector<1x512xf32>
    %6 = vector.extract_strided_slice %1 {offsets = [4, 0], sizes = [1, 16], strides = [1, 1]} : vector<8x512xf32> to vector<1x16xf32>
    %7 = vector.extract_strided_slice %1 {offsets = [5, 0], sizes = [1, 16], strides = [1, 1]} : vector<8x512xf32> to vector<1x16xf32>
    %c0_3 = arith.constant 0 : index
    %c0_4 = arith.constant 0 : index
    %8 = vector.load %arg1[%c0_3, %c0_4] : memref<32x128xf32, #tpu.memory_space<vmem>>, vector<16x128xf32>
    %c16 = arith.constant 16 : index
    %c0_5 = arith.constant 0 : index
    %9 = vector.load %arg1[%c16, %c0_5] : memref<32x128xf32, #tpu.memory_space<vmem>>, vector<16x128xf32>
    %cst = arith.constant dense<0.000000e+00> : vector<8x128xf32>
    %10 = tpu.matmul %0, %8, %cst {dimension_numbers = #tpu.dot_dimension_numbers<[1], [0], [0], [1], [0, 0, 1, 1], [], []>} : vector<8x16xf32>, vector<16x128xf32>, vector<8x128xf32> -> vector<8x128xf32>
    %11 = vector.broadcast %2 : vector<1x128xf32> to vector<8x128xf32>
    %12 = arith.addf %10, %11 : vector<8x128xf32>
    %cst_6 = arith.constant dense<0.000000e+00> : vector<8x16xf32>
    %13 = tpu.matmul %12, %9, %cst_6 {dimension_numbers = #tpu.dot_dimension_numbers<[1], [1], [0], [0], [0, 0, 1, 0], [], []>} : vector<8x128xf32>, vector<16x128xf32>, vector<8x16xf32> -> vector<8x16xf32>
    %14 = vector.broadcast %7 : vector<1x16xf32> to vector<8x16xf32>
    %15 = arith.addf %13, %14 : vector<8x16xf32>
    %16 = tpu.iota {dimensions = array<i32: 1>} : vector<8x16xi32>
    %c12_i32 = arith.constant 12 : i32
    %17 = vector.broadcast %c12_i32 : i32 to vector<8x16xi32>
    %18 = arith.cmpi slt, %16, %17 : vector<8x16xi32>
    %19 = math.tanh %15 : vector<8x16xf32>
    %cst_7 = arith.constant 2.000000e+00 : f32
    %20 = vector.broadcast %cst_7 : f32 to vector<8x16xf32>
    %21 = arith.mulf %20, %19 : vector<8x16xf32>
    %cst_8 = arith.constant 0.000000e+00 : f32
    %22 = vector.broadcast %cst_8 : f32 to vector<8x16xf32>
    %23 = arith.maximumf %15, %22 : vector<8x16xf32>
    %24 = math.absf %15 : vector<8x16xf32>
    %cst_9 = arith.constant 0.000000e+00 : f32
    %25 = vector.broadcast %cst_9 : f32 to vector<8x16xf32>
    %26 = arith.subf %25, %24 : vector<8x16xf32>
    %27 = math.exp %26 : vector<8x16xf32>
    %28 = math.log1p %27 : vector<8x16xf32>
    %29 = arith.addf %23, %28 : vector<8x16xf32>
    %cst_10 = arith.constant 9.99999974E-6 : f32
    %30 = vector.broadcast %cst_10 : f32 to vector<8x16xf32>
    %31 = arith.addf %29, %30 : vector<8x16xf32>
    %32 = arith.select %18, %21, %31 : vector<8x16xi1>, vector<8x16xf32>
    %33 = math.tanh %12 : vector<8x128xf32>
    tpu.wait_dma2 semaphore(%arg6 : memref<!tpu.dma_semaphore, #tpu.memory_space<semaphore_mem>>) src(%arg3 : memref<656x512xf32, #tpu.memory_space<any>>) dst(%arg5 : memref<656x512xf32, #tpu.memory_space<vmem>>)
    %c0_11 = arith.constant 0 : index
    %c0_12 = arith.constant 0 : index
    %34 = vector.load %arg5[%c0_11, %c0_12] : memref<656x512xf32, #tpu.memory_space<vmem>>, vector<128x512xf32>
    %c128 = arith.constant 128 : index
    %c0_13 = arith.constant 0 : index
    %35 = vector.load %arg5[%c128, %c0_13] : memref<656x512xf32, #tpu.memory_space<vmem>>, vector<256x512xf32>
    %c384 = arith.constant 384 : index
    %c0_14 = arith.constant 0 : index
    %36 = vector.load %arg5[%c384, %c0_14] : memref<656x512xf32, #tpu.memory_space<vmem>>, vector<256x512xf32>
    %c640 = arith.constant 640 : index
    %c0_15 = arith.constant 0 : index
    %37 = vector.load %arg5[%c640, %c0_15] : memref<656x512xf32, #tpu.memory_space<vmem>>, vector<16x512xf32>
    %cst_16 = arith.constant dense<0.000000e+00> : vector<8x512xf32>
    %38 = tpu.matmul %33, %34, %cst_16 {dimension_numbers = #tpu.dot_dimension_numbers<[1], [0], [0], [1], [0, 0, 1, 1], [], []>} : vector<8x128xf32>, vector<128x512xf32>, vector<8x512xf32> -> vector<8x512xf32>
    %39 = vector.broadcast %3 : vector<1x512xf32> to vector<8x512xf32>
    %40 = arith.addf %38, %39 : vector<8x512xf32>
    %41 = vector.extract_strided_slice %40 {offsets = [0, 0], sizes = [8, 256], strides = [1, 1]} : vector<8x512xf32> to vector<8x256xf32>
    %42 = vector.extract_strided_slice %40 {offsets = [0, 256], sizes = [8, 256], strides = [1, 1]} : vector<8x512xf32> to vector<8x256xf32>
    %cst_17 = arith.constant dense<0.000000e+00> : vector<8x512xf32>
    %43 = tpu.matmul %41, %35, %cst_17 {dimension_numbers = #tpu.dot_dimension_numbers<[1], [0], [0], [1], [0, 0, 1, 1], [], []>} : vector<8x256xf32>, vector<256x512xf32>, vector<8x512xf32> -> vector<8x512xf32>
    %44 = vector.broadcast %4 : vector<1x512xf32> to vector<8x512xf32>
    %45 = arith.addf %43, %44 : vector<8x512xf32>
    %46 = math.tanh %45 : vector<8x512xf32>
    %cst_18 = arith.constant dense<0.000000e+00> : vector<8x512xf32>
    %47 = tpu.matmul %42, %36, %cst_18 {dimension_numbers = #tpu.dot_dimension_numbers<[1], [0], [0], [1], [0, 0, 1, 1], [], []>} : vector<8x256xf32>, vector<256x512xf32>, vector<8x512xf32> -> vector<8x512xf32>
    %48 = vector.broadcast %5 : vector<1x512xf32> to vector<8x512xf32>
    %49 = arith.addf %47, %48 : vector<8x512xf32>
    %50 = math.tanh %49 : vector<8x512xf32>
    %51 = tpu.concatenate %46, %50 in 0 : vector<8x512xf32>, vector<8x512xf32> -> vector<16x512xf32>
    %cst_19 = arith.constant dense<0.000000e+00> : vector<16x16xf32>
    %52 = tpu.matmul %51, %37, %cst_19 {dimension_numbers = #tpu.dot_dimension_numbers<[1], [1], [0], [0], [0, 0, 1, 0], [], []>} : vector<16x512xf32>, vector<16x512xf32>, vector<16x16xf32> -> vector<16x16xf32>
    %53 = vector.broadcast %6 : vector<1x16xf32> to vector<16x16xf32>
    %54 = arith.addf %52, %53 : vector<16x16xf32>
    %c4_i32 = arith.constant 4 : i32
    %55 = vector.broadcast %c4_i32 : i32 to vector<8x16xi32>
    %56 = arith.cmpi slt, %16, %55 : vector<8x16xi32>
    %57 = vector.extract_strided_slice %54 {offsets = [0, 0], sizes = [8, 16], strides = [1, 1]} : vector<16x16xf32> to vector<8x16xf32>
    %58 = vector.extract_strided_slice %54 {offsets = [8, 0], sizes = [8, 16], strides = [1, 1]} : vector<16x16xf32> to vector<8x16xf32>
    %59 = arith.select %56, %57, %58 : vector<8x16xi1>, vector<8x16xf32>
    %c8_i32 = arith.constant 8 : i32
    %60 = vector.broadcast %c8_i32 : i32 to vector<8x16xi32>
    %61 = arith.cmpi slt, %16, %60 : vector<8x16xi32>
    %62 = arith.select %61, %59, %32 : vector<8x16xi1>, vector<8x16xf32>
    %c0_20 = arith.constant 0 : index
    %c0_21 = arith.constant 0 : index
    %63 = vector.load %arg4[%c0_20, %c0_21] : memref<8x16xf32, #tpu.memory_space<vmem>>, vector<8x16xf32>
    tpu.vector_store %arg4[%c0_20, %c0_21], %62 {strides = array<i32>} : memref<8x16xf32, #tpu.memory_space<vmem>>, vector<8x16xf32>,
    return
  }
}

</mosaic_0001>

<bundles_post_ra>
// kernel: net_forward.1
= control target key start
LH: loop header
LB: loop body
LE: loop exit
PB: predicated region body
PF: predicated region fallthrough
CT: control target
= control target key end

     0   :  { %9 = vsyncpa [#allocation5], 0  ;;  %s1242_s0 = inlined_call_operand.hbm [shape: f32[8,16], index: 0, kind: input, shape index: {}]   ;;  %s1243_s1 = inlined_call_operand.hbm [shape: f32[32,128], index: 1, kind: input, shape index: {}]   ;;  %s1244_s2 = inlined_call_operand.hbm [shape: f32[8,512], index: 2, kind: input, shape index: {}]   ;;  %s1245_s3 = inlined_call_operand.hbm [shape: f32[656,512], index: 3, kind: input, shape index: {}]   ;;  %s1246_s4 = inlined_call_operand.vmem [shape: f32[8,16], index: 4, kind: output, shape index: {}]  }
   0x1   :  { %10 = vsyncpa [#allocation7], 0  ;;  %s26_s17 = sshll.u32 %s1243_s1, 4  ;;  %s1145_s18 = smov [#allocation6]   ;;  %s27_s17 = int_to_ptr.hbm [resolvable:$true] %s26_s17 }
   0x2   :  { %s28_s19 = sshll.u32 %s1145_s18, 4  ;;  %s16_s22 = sshll.u32 %s1242_s0, 4  ;;  %s29_s19 = int_to_ptr.vmem [resolvable:$true] %s28_s19  ;;  %s17_s22 = int_to_ptr.hbm [resolvable:$true] %s16_s22 }
   0x3   :  { %s1146_s23 = smov 128   ;;  %s1147_s24 = smov 8  }
   0x4   :  { %34 = dma.hbm_to_vmem [thread:$0]  %s27_s17, 512, %s29_s19, [#allocation7], %s1146_s23, %s1146_s23, %s1147_s24  }
   0x5   :  { %s1148_s25 = smov [#allocation4]   ;;  %s40_s29 = sshll.u32 %s1244_s2, 4  ;;  %s41_s29 = int_to_ptr.hbm [resolvable:$true] %s40_s29 }
   0x6   :  { %s18_s26 = sshll.u32 %s1148_s25, 4  ;;  %s1149_s1 = smov [#allocation8]   ;;  %s19_s26 = int_to_ptr.vmem [resolvable:$true] %s18_s26 }
   0x7   :  { %21 = dma.hbm_to_vmem [thread:$0]  %s17_s22, 128, %s19_s26, [#allocation5]  }
   0x8   :  { %s42_s30 = sshll.u32 %s1149_s1, 4  ;;  %s43_s30 = int_to_ptr.vmem [resolvable:$true] %s42_s30 }
   0x9   :  { %45 = dma.hbm_to_vmem [thread:$0]  %s41_s29, 512, %s43_s30, [#allocation7]  }
   0xa   :  { %1139 = dma.done.wait [#allocation5], 128  }
   0xb   :  { %1140 = vsyncadd [#allocation5], 4294967168 }
   0xc   :  { %1141 = dma.done.wait [#allocation7], 1024  }
   0xd   :  { %1142 = vsyncadd [#allocation7], 4294966272  ;;  %v1185_v0 = vld [vmem:[#allocation8 + $0x8] sm:$0xff]  ;;  %v1187_v1 = vld [vmem:[#allocation8 + $0x10] sm:$0xff]  ;;  %vm81_vm0 = vcmask 130048   ;;  %s65_s5 = sshll.u32 %s1245_s3, 4  ;;  %v126_v22 = vlaneseq  ;;  %s66_s5 = int_to_ptr.hbm [resolvable:$true] %s65_s5 }
   0xe   :  { %v1189_v2 = vld [vmem:[#allocation8 + $0x18] sm:$0xff]  ;;  %v77_v3 = vld [vmem:[#allocation6 + $0x8] sm:$0xff]  ;;  %v76_v4 = vld [vmem:[#allocation6] sm:$0xff]  ;;  %s1150_s6 = smov [#allocation2]  }
   0xf   :  { %99 = vmatpush.msra.mxu0 %v77_v3  ;;  %v71_v5 = vld [vmem:[#allocation4] sm:$0xff]  ;;  %v78_v7 = vld [vmem:[#allocation6 + $0x10] sm:$0xff]  ;;  %v1192_v8 = vld [vmem:[#allocation8] sm:$0xff]  ;;  %s67_s7 = sshll.u32 %s1150_s6, 4  ;;  %v1201_v26 = vand.u32 127, %v126_v22  ;;  %s68_s7 = int_to_ptr.vmem [resolvable:$true] %s67_s7 }
  0x10   :  { %v79_v6 = vld [vmem:[#allocation6 + $0x18] sm:$0xff]  ;;  %v80_v9 = vperm.slane %v1192_v8, 0  ;;  %70 = dma.hbm_to_vmem [thread:$0]  %s66_s5, 41984, %s68_s7, [#allocation3]  ;;  %v105_v13 = vperm.slane %v1192_v8, 5 }
  0x11   :  { %120 = vmatpush.xpose.msra.mxu1 %v79_v6  ;;  %100 = vmatpush.msra.mxu0 %v76_v4  ;;  %vm128_vm2 = vcmp.lt.s32.totalorder %v1201_v26, 12 }
  0x12   :  { %1011 = vmatmul.msk.f32.vlgmr.msra.gmra.mxu0 %vm81_vm0, %v71_v5 }
  0x15   :  { %121 = vmatpush.xpose.msra.mxu1 %v78_v7 }
  0x8f   :  { %v102_v10 = vpop.f32.mrf.mxu0 }
  0x90   :  { %v103_v11 = vadd.f32 %v102_v10, %v80_v9 }
  0x92   :  { %1019 = vtanh.f32 %v103_v11  ;;  %122 = vmatmul.f32.vlgmr.msra.gmra.mxu1 %v103_v11 }
  0x98   :  { %v1195_v12 = vpop.eup %1019 }
 0x10f   :  { %v123_v14 = vpop.f32.mrf.mxu1 }
 0x110   :  { %v124_v15 = vadd.f32 %v123_v14, %v105_v13 }
 0x112   :  { %v132_v16 = vand.u32 2147483647, %v124_v15  ;;  %v131_v29 = vmax.f32 %v124_v15, 0.0 }
 0x114   :  { %v133_v17 = vsub.f32 0.0, %v132_v16 }
 0x116   :  { %v134_v18 = vmul.f32 1.442695, %v133_v17 }
 0x118   :  { %1021 = vpow2.f32 %v134_v18 }
 0x11e   :  { %v1022_v19 = vpop.eup %1021 }
 0x11f   :  { %v136_v20 = vadd.f32 1.0, %v1022_v19  ;;  %v139_v21 = vmul.f32 -0.5, %v1022_v19  ;;  %v142_v24 = vand.u32 2147483647, %v1022_v19 }
 0x121   :  { %1023 = vlog2.f32 %v136_v20  ;;  %v140_v23 = vadd.f32 1.0, %v139_v21  ;;  %vm143_vm1 = vcmp.lt.f32.partialorder %v142_v24, 0.0004427343 }
 0x122   :  { %1025 = vtanh.f32 %v124_v15 }
 0x123   :  { %v141_v28 = vmul.f32 %v1022_v19, %v140_v23 }
 0x127   :  { %v1024_v25 = vpop.eup %1023 }
 0x128   :  { %v138_v27 = vmul.f32 0.6931472, %v1024_v25  ;;  %v1026_v30 = vpop.eup %1025 }
 0x129   :  { %v130_v33 = vmul.f32 2.0, %v1026_v30 }
 0x12a   :  { %v144_v31 = vsel %vm143_vm1, %v141_v28, %v138_v27 }
 0x12b   :  { %v145_v32 = vadd.f32 %v144_v31, %v131_v29 }
 0x12d   :  { %v146_v34 = vadd.f32 1e-05, %v145_v32 }
 0x12f   :  { %v1204_v35 = vsel %vm128_vm2, %v130_v33, %v146_v34 }
 0x130   :  { %1143 = dma.done.wait [#allocation3], 41984 }
 0x131   :  { %1144 = vsyncadd [#allocation3], 4294925312  ;;  %v213_v36 = vld [vmem:[#allocation2 + $0x1e0] sm:$0xff]  ;;  %v214_v37 = vld [vmem:[#allocation2 + $0x1e8] sm:$0xff]  ;;  %vm994_vm3 = vcmp.lt.s32.totalorder %v1201_v26, 4  ;;  %vm996_vm4 = vcmp.lt.s32.totalorder %v1201_v26, 8 }
 0x132   :  { %v209_v38 = vld [vmem:[#allocation2 + $0x1c0] sm:$0xff]  ;;  %485 = vmatpush.msra.mxu2 %v213_v36  ;;  %505 = vmatpush.msra.mxu3 %v214_v37  ;;  %v210_v39 = vld [vmem:[#allocation2 + $0x1c8] sm:$0xff]  ;;  %v215_v50 = vld [vmem:[#allocation2 + $0x1f0] sm:$0xff] }
 0x133   :  { %v205_v40 = vld [vmem:[#allocation2 + $0x1a0] sm:$0xff]  ;;  %v206_v41 = vld [vmem:[#allocation2 + $0x1a8] sm:$0xff]  ;;  %v211_v51 = vld [vmem:[#allocation2 + $0x1d0] sm:$0xff]  ;;  %525 = vmatpush.msrb.mxu0 %v215_v50 }
 0x134   :  { %486 = vmatpush.msra.mxu2 %v209_v38  ;;  %506 = vmatpush.msra.mxu3 %v210_v39  ;;  %v201_v42 = vld [vmem:[#allocation2 + $0x180] sm:$0xff]  ;;  %v202_v43 = vld [vmem:[#allocation2 + $0x188] sm:$0xff]  ;;  %v216_v52 = vld [vmem:[#allocation2 + $0x1f8] sm:$0xff] }
 0x135   :  { %v197_v44 = vld [vmem:[#allocation2 + $0x160] sm:$0xff]  ;;  %v198_v45 = vld [vmem:[#allocation2 + $0x168] sm:$0xff]  ;;  %545 = vmatpush.msrb.mxu1 %v216_v52  ;;  %v212_v55 = vld [vmem:[#allocation2 + $0x1d8] sm:$0xff]  ;;  %526 = vmatpush.msrb.mxu0 %v211_v51 }
 0x136   :  { %487 = vmatpush.msra.mxu2 %v205_v40  ;;  %507 = vmatpush.msra.mxu3 %v206_v41  ;;  %v193_v46 = vld [vmem:[#allocation2 + $0x140] sm:$0xff]  ;;  %v194_v47 = vld [vmem:[#allocation2 + $0x148] sm:$0xff]  ;;  %v207_v56 = vld [vmem:[#allocation2 + $0x1b0] sm:$0xff] }
 0x137   :  { %v189_v48 = vld [vmem:[#allocation2 + $0x120] sm:$0xff]  ;;  %v190_v49 = vld [vmem:[#allocation2 + $0x128] sm:$0xff]  ;;  %v208_v57 = vld [vmem:[#allocation2 + $0x1b8] sm:$0xff]  ;;  %546 = vmatpush.msrb.mxu1 %v212_v55  ;;  %527 = vmatpush.msrb.mxu0 %v207_v56 }
 0x138   :  { %488 = vmatpush.msra.mxu2 %v201_v42  ;;  %508 = vmatpush.msra.mxu3 %v202_v43  ;;  %v185_v53 = vld [vmem:[#allocation2 + $0x100] sm:$0xff]  ;;  %v186_v54 = vld [vmem:[#allocation2 + $0x108] sm:$0xff]  ;;  %v203_v60 = vld [vmem:[#allocation2 + $0x190] sm:$0xff] }
 0x139   :  { %v181_v58 = vld [vmem:[#allocation2 + $0xe0] sm:$0xff]  ;;  %v182_v59 = vld [vmem:[#allocation2 + $0xe8] sm:$0xff]  ;;  %v204_v61 = vld [vmem:[#allocation2 + $0x198] sm:$0xff]  ;;  %547 = vmatpush.msrb.mxu1 %v208_v57  ;;  %528 = vmatpush.msrb.mxu0 %v203_v60 }
 0x13a   :  { %489 = vmatpush.msra.mxu2 %v197_v44  ;;  %509 = vmatpush.msra.mxu3 %v198_v45  ;;  %v177_v62 = vld [vmem:[#allocation2 + $0xc0] sm:$0xff]  ;;  %v178_v63 = vld [vmem:[#allocation2 + $0xc8] sm:$0xff]  ;;  %v199_v3 = vld [vmem:[#allocation2 + $0x170] sm:$0xff] }
 0x13b   :  { %v200_v4 = vld [vmem:[#allocation2 + $0x178] sm:$0xff]  ;;  %v173_v5 = vld [vmem:[#allocation2 + $0xa0] sm:$0xff]  ;;  %v174_v6 = vld [vmem:[#allocation2 + $0xa8] sm:$0xff]  ;;  %548 = vmatpush.msrb.mxu1 %v204_v61  ;;  %529 = vmatpush.msrb.mxu0 %v199_v3 }
 0x13c   :  { %490 = vmatpush.msra.mxu2 %v193_v46  ;;  %510 = vmatpush.msra.mxu3 %v194_v47  ;;  %v195_v7 = vld [vmem:[#allocation2 + $0x150] sm:$0xff]  ;;  %v196_v9 = vld [vmem:[#allocation2 + $0x158] sm:$0xff]  ;;  %v169_v10 = vld [vmem:[#allocation2 + $0x80] sm:$0xff] }
 0x13d   :  { %v170_v11 = vld [vmem:[#allocation2 + $0x88] sm:$0xff]  ;;  %549 = vmatpush.msrb.mxu1 %v200_v4  ;;  %v191_v13 = vld [vmem:[#allocation2 + $0x130] sm:$0xff]  ;;  %v192_v14 = vld [vmem:[#allocation2 + $0x138] sm:$0xff]  ;;  %530 = vmatpush.msrb.mxu0 %v195_v7 }
 0x13e   :  { %491 = vmatpush.msra.mxu2 %v189_v48  ;;  %511 = vmatpush.msra.mxu3 %v190_v49  ;;  %v165_v15 = vld [vmem:[#allocation2 + $0x60] sm:$0xff]  ;;  %v166_v16 = vld [vmem:[#allocation2 + $0x68] sm:$0xff]  ;;  %v187_v17 = vld [vmem:[#allocation2 + $0x110] sm:$0xff] }
 0x13f   :  { %550 = vmatpush.msrb.mxu1 %v196_v9  ;;  %v188_v18 = vld [vmem:[#allocation2 + $0x118] sm:$0xff]  ;;  %v161_v19 = vld [vmem:[#allocation2 + $0x40] sm:$0xff]  ;;  %v162_v20 = vld [vmem:[#allocation2 + $0x48] sm:$0xff]  ;;  %531 = vmatpush.msrb.mxu0 %v191_v13 }
 0x140   :  { %492 = vmatpush.msra.mxu2 %v185_v53  ;;  %512 = vmatpush.msra.mxu3 %v186_v54  ;;  %v183_v21 = vld [vmem:[#allocation2 + $0xf0] sm:$0xff]  ;;  %v184_v22 = vld [vmem:[#allocation2 + $0xf8] sm:$0xff]  ;;  %v157_v23 = vld [vmem:[#allocation2 + $0x20] sm:$0xff] }
 0x141   :  { %551 = vmatpush.msrb.mxu1 %v192_v14  ;;  %v158_v24 = vld [vmem:[#allocation2 + $0x28] sm:$0xff]  ;;  %532 = vmatpush.msrb.mxu0 %v187_v17  ;;  %v179_v25 = vld [vmem:[#allocation2 + $0xd0] sm:$0xff]  ;;  %v180_v27 = vld [vmem:[#allocation2 + $0xd8] sm:$0xff] }
 0x142   :  { %493 = vmatpush.msra.mxu2 %v181_v58  ;;  %513 = vmatpush.msra.mxu3 %v182_v59  ;;  %v153_v28 = vld [vmem:[#allocation2] sm:$0xff]  ;;  %v154_v29 = vld [vmem:[#allocation2 + $0x8] sm:$0xff]  ;;  %v175_v30 = vld [vmem:[#allocation2 + $0xb0] sm:$0xff] }
 0x143   :  { %552 = vmatpush.msrb.mxu1 %v188_v18  ;;  %533 = vmatpush.msrb.mxu0 %v183_v21  ;;  %v176_v31 = vld [vmem:[#allocation2 + $0xb8] sm:$0xff]  ;;  %v277_v32 = vld [vmem:[#allocation2 + $0x3e0] sm:$0xff]  ;;  %v171_v34 = vld [vmem:[#allocation2 + $0x90] sm:$0xff] }
 0x144   :  { %494 = vmatpush.msra.mxu2 %v177_v62  ;;  %514 = vmatpush.msra.mxu3 %v178_v63  ;;  %v341_v33 = vld [vmem:[#allocation2 + $0x5e0] sm:$0xff]  ;;  %v172_v36 = vld [vmem:[#allocation2 + $0x98] sm:$0xff]  ;;  %v167_v39 = vld [vmem:[#allocation2 + $0x70] sm:$0xff] }
 0x145   :  { %553 = vmatpush.msrb.mxu1 %v184_v22  ;;  %534 = vmatpush.msrb.mxu0 %v179_v25  ;;  %v273_v37 = vld [vmem:[#allocation2 + $0x3c0] sm:$0xff]  ;;  %v168_v40 = vld [vmem:[#allocation2 + $0x78] sm:$0xff]  ;;  %v163_v43 = vld [vmem:[#allocation2 + $0x50] sm:$0xff] }
 0x146   :  { %495 = vmatpush.msra.mxu2 %v173_v5  ;;  %515 = vmatpush.msra.mxu3 %v174_v6  ;;  %v337_v38 = vld [vmem:[#allocation2 + $0x5c0] sm:$0xff]  ;;  %v164_v44 = vld [vmem:[#allocation2 + $0x58] sm:$0xff]  ;;  %v159_v47 = vld [vmem:[#allocation2 + $0x30] sm:$0xff] }
 0x147   :  { %554 = vmatpush.msrb.mxu1 %v180_v27  ;;  %535 = vmatpush.msrb.mxu0 %v175_v30  ;;  %v269_v41 = vld [vmem:[#allocation2 + $0x3a0] sm:$0xff]  ;;  %v160_v48 = vld [vmem:[#allocation2 + $0x38] sm:$0xff]  ;;  %v155_v51 = vld [vmem:[#allocation2 + $0x10] sm:$0xff] }
 0x148   :  { %496 = vmatpush.msra.mxu2 %v169_v10  ;;  %516 = vmatpush.msra.mxu3 %v170_v11  ;;  %v333_v42 = vld [vmem:[#allocation2 + $0x5a0] sm:$0xff]  ;;  %v156_v52 = vld [vmem:[#allocation2 + $0x18] sm:$0xff]  ;;  %v278_v53 = vld [vmem:[#allocation2 + $0x3e8] sm:$0xff] }
 0x149   :  { %555 = vmatpush.msrb.mxu1 %v176_v31  ;;  %536 = vmatpush.msrb.mxu0 %v171_v34  ;;  %v265_v45 = vld [vmem:[#allocation2 + $0x380] sm:$0xff]  ;;  %v342_v54 = vld [vmem:[#allocation2 + $0x5e8] sm:$0xff] }
 0x14a   :  { %497 = vmatpush.msra.mxu2 %v165_v15  ;;  %517 = vmatpush.msra.mxu3 %v166_v16  ;;  %v329_v46 = vld [vmem:[#allocation2 + $0x580] sm:$0xff]  ;;  %v274_v57 = vld [vmem:[#allocation2 + $0x3c8] sm:$0xff] }
 0x14b   :  { %556 = vmatpush.msrb.mxu1 %v172_v36  ;;  %537 = vmatpush.msrb.mxu0 %v167_v39  ;;  %v261_v49 = vld [vmem:[#allocation2 + $0x360] sm:$0xff]  ;;  %v338_v58 = vld [vmem:[#allocation2 + $0x5c8] sm:$0xff] }
 0x14c   :  { %498 = vmatpush.msra.mxu2 %v161_v19  ;;  %518 = vmatpush.msra.mxu3 %v162_v20  ;;  %v325_v50 = vld [vmem:[#allocation2 + $0x560] sm:$0xff]  ;;  %v270_v61 = vld [vmem:[#allocation2 + $0x3a8] sm:$0xff] }
 0x14d   :  { %557 = vmatpush.msrb.mxu1 %v168_v40  ;;  %538 = vmatpush.msrb.mxu0 %v163_v43  ;;  %v257_v55 = vld [vmem:[#allocation2 + $0x340] sm:$0xff]  ;;  %v334_v62 = vld [vmem:[#allocation2 + $0x5a8] sm:$0xff] }
 0x14e   :  { %499 = vmatpush.msra.mxu2 %v157_v23  ;;  %519 = vmatpush.msra.mxu3 %v158_v24  ;;  %v321_v56 = vld [vmem:[#allocation2 + $0x540] sm:$0xff]  ;;  %v266_v4 = vld [vmem:[#allocation2 + $0x388] sm:$0xff] }
 0x14f   :  { %558 = vmatpush.msrb.mxu1 %v164_v44  ;;  %539 = vmatpush.msrb.mxu0 %v159_v47  ;;  %v253_v59 = vld [vmem:[#allocation2 + $0x320] sm:$0xff]  ;;  %v330_v5 = vld [vmem:[#allocation2 + $0x588] sm:$0xff] }
 0x150   :  { %500 = vmatpush.msra.mxu2 %v153_v28  ;;  %520 = vmatpush.msra.mxu3 %v154_v29  ;;  %v317_v60 = vld [vmem:[#allocation2 + $0x520] sm:$0xff]  ;;  %v262_v7 = vld [vmem:[#allocation2 + $0x368] sm:$0xff] }
 0x151   :  { %501 = vmatmul.f32.vlgmr.msra.gmra.mxu2 %v1195_v12  ;;  %521 = vmatmul.f32.vlgmr.msra.gmra.mxu3 %v1195_v12  ;;  %v249_v63 = vld [vmem:[#allocation2 + $0x300] sm:$0xff]  ;;  %v326_v9 = vld [vmem:[#allocation2 + $0x568] sm:$0xff] }
 0x152   :  { %569 = vmatpush.msrb.mxu2 %v277_v32  ;;  %589 = vmatpush.msrb.mxu3 %v341_v33  ;;  %v313_v3 = vld [vmem:[#allocation2 + $0x500] sm:$0xff]  ;;  %v258_v13 = vld [vmem:[#allocation2 + $0x348] sm:$0xff] }
 0x153   :  { %559 = vmatpush.msrb.mxu1 %v160_v48  ;;  %540 = vmatpush.msrb.mxu0 %v155_v51  ;;  %v309_v6 = vld [vmem:[#allocation2 + $0x4e0] sm:$0xff]  ;;  %v322_v14 = vld [vmem:[#allocation2 + $0x548] sm:$0xff] }
 0x154   :  { %570 = vmatpush.msrb.mxu2 %v273_v37  ;;  %590 = vmatpush.msrb.mxu3 %v337_v38  ;;  %v241_v10 = vld [vmem:[#allocation2 + $0x2c0] sm:$0xff]  ;;  %v254_v17 = vld [vmem:[#allocation2 + $0x328] sm:$0xff] }
 0x155   :  { %560 = vmatpush.msrb.mxu1 %v156_v52  ;;  %541 = vmatmul.f32.vlgmr.msrb.gmra.mxu0 %v1195_v12  ;;  %v305_v11 = vld [vmem:[#allocation2 + $0x4c0] sm:$0xff]  ;;  %v318_v18 = vld [vmem:[#allocation2 + $0x528] sm:$0xff] }
 0x156   :  { %571 = vmatpush.msrb.mxu2 %v269_v41  ;;  %591 = vmatpush.msrb.mxu3 %v333_v42  ;;  %v237_v15 = vld [vmem:[#allocation2 + $0x2a0] sm:$0xff]  ;;  %v250_v21 = vld [vmem:[#allocation2 + $0x308] sm:$0xff]  ;;  %v279_v41 = vld [vmem:[#allocation2 + $0x3f0] sm:$0xff] }
 0x157   :  { %561 = vmatmul.f32.vlgmr.msrb.gmra.mxu1 %v1195_v12  ;;  %609 = vmatpush.msra.mxu0 %v278_v53  ;;  %v245_v12 = vld [vmem:[#allocation2 + $0x2e0] sm:$0xff]  ;;  %v314_v22 = vld [vmem:[#allocation2 + $0x508] sm:$0xff]  ;;  %v343_v42 = vld [vmem:[#allocation2 + $0x5f0] sm:$0xff] }
 0x158   :  { %572 = vmatpush.msrb.mxu2 %v265_v45  ;;  %592 = vmatpush.msrb.mxu3 %v329_v46  ;;  %v301_v16 = vld [vmem:[#allocation2 + $0x4a0] sm:$0xff]  ;;  %v246_v25 = vld [vmem:[#allocation2 + $0x2e8] sm:$0xff]  ;;  %v275_v45 = vld [vmem:[#allocation2 + $0x3d0] sm:$0xff] }
 0x159   :  { %629 = vmatpush.msra.mxu1 %v342_v54  ;;  %610 = vmatpush.msra.mxu0 %v274_v57  ;;  %v233_v19 = vld [vmem:[#allocation2 + $0x280] sm:$0xff]  ;;  %v310_v27 = vld [vmem:[#allocation2 + $0x4e8] sm:$0xff]  ;;  %v339_v46 = vld [vmem:[#allocation2 + $0x5d0] sm:$0xff] }
 0x15a   :  { %573 = vmatpush.msrb.mxu2 %v261_v49  ;;  %593 = vmatpush.msrb.mxu3 %v325_v50  ;;  %v297_v20 = vld [vmem:[#allocation2 + $0x480] sm:$0xff]  ;;  %v242_v30 = vld [vmem:[#allocation2 + $0x2c8] sm:$0xff]  ;;  %v271_v49 = vld [vmem:[#allocation2 + $0x3b0] sm:$0xff] }
 0x15b   :  { %630 = vmatpush.msra.mxu1 %v338_v58  ;;  %611 = vmatpush.msra.mxu0 %v270_v61  ;;  %v229_v23 = vld [vmem:[#allocation2 + $0x260] sm:$0xff]  ;;  %v306_v31 = vld [vmem:[#allocation2 + $0x4c8] sm:$0xff]  ;;  %v335_v50 = vld [vmem:[#allocation2 + $0x5b0] sm:$0xff] }
 0x15c   :  { %574 = vmatpush.msrb.mxu2 %v257_v55  ;;  %594 = vmatpush.msrb.mxu3 %v321_v56  ;;  %v293_v24 = vld [vmem:[#allocation2 + $0x460] sm:$0xff]  ;;  %v238_v34 = vld [vmem:[#allocation2 + $0x2a8] sm:$0xff]  ;;  %v267_v53 = vld [vmem:[#allocation2 + $0x390] sm:$0xff] }
 0x15d   :  { %631 = vmatpush.msra.mxu1 %v334_v62  ;;  %612 = vmatpush.msra.mxu0 %v266_v4  ;;  %v225_v28 = vld [vmem:[#allocation2 + $0x240] sm:$0xff]  ;;  %v302_v36 = vld [vmem:[#allocation2 + $0x4a8] sm:$0xff]  ;;  %v331_v54 = vld [vmem:[#allocation2 + $0x590] sm:$0xff] }
 0x15e   :  { %575 = vmatpush.msrb.mxu2 %v253_v59  ;;  %595 = vmatpush.msrb.mxu3 %v317_v60  ;;  %v289_v29 = vld [vmem:[#allocation2 + $0x440] sm:$0xff]  ;;  %v234_v39 = vld [vmem:[#allocation2 + $0x288] sm:$0xff]  ;;  %v280_v57 = vld [vmem:[#allocation2 + $0x3f8] sm:$0xff] }
 0x15f   :  { %632 = vmatpush.msra.mxu1 %v330_v5  ;;  %613 = vmatpush.msra.mxu0 %v262_v7  ;;  %v221_v32 = vld [vmem:[#allocation2 + $0x220] sm:$0xff]  ;;  %v298_v40 = vld [vmem:[#allocation2 + $0x488] sm:$0xff]  ;;  %v344_v58 = vld [vmem:[#allocation2 + $0x5f8] sm:$0xff] }
 0x160   :  { %576 = vmatpush.msrb.mxu2 %v249_v63  ;;  %596 = vmatpush.msrb.mxu3 %v313_v3  ;;  %v285_v33 = vld [vmem:[#allocation2 + $0x420] sm:$0xff]  ;;  %v230_v43 = vld [vmem:[#allocation2 + $0x268] sm:$0xff]  ;;  %v263_v59 = vld [vmem:[#allocation2 + $0x370] sm:$0xff] }
 0x161   :  { %633 = vmatpush.msra.mxu1 %v326_v9  ;;  %614 = vmatpush.msra.mxu0 %v258_v13  ;;  %v217_v37 = vld [vmem:[#allocation2 + $0x200] sm:$0xff]  ;;  %v294_v44 = vld [vmem:[#allocation2 + $0x468] sm:$0xff]  ;;  %v327_v60 = vld [vmem:[#allocation2 + $0x570] sm:$0xff] }
 0x162   :  { %577 = vmatpush.msrb.mxu2 %v245_v12  ;;  %597 = vmatpush.msrb.mxu3 %v309_v6  ;;  %v281_v38 = vld [vmem:[#allocation2 + $0x400] sm:$0xff]  ;;  %v226_v47 = vld [vmem:[#allocation2 + $0x248] sm:$0xff]  ;;  %v276_v61 = vld [vmem:[#allocation2 + $0x3d8] sm:$0xff] }
 0x163   :  { %634 = vmatpush.msra.mxu1 %v322_v14  ;;  %615 = vmatpush.msra.mxu0 %v254_v17  ;;  %v290_v48 = vld [vmem:[#allocation2 + $0x448] sm:$0xff]  ;;  %v340_v62 = vld [vmem:[#allocation2 + $0x5d8] sm:$0xff]  ;;  %v259_v63 = vld [vmem:[#allocation2 + $0x350] sm:$0xff] }
 0x164   :  { %578 = vmatpush.msrb.mxu2 %v241_v10  ;;  %598 = vmatpush.msrb.mxu3 %v305_v11  ;;  %v222_v51 = vld [vmem:[#allocation2 + $0x228] sm:$0xff]  ;;  %v323_v3 = vld [vmem:[#allocation2 + $0x550] sm:$0xff]  ;;  %v272_v4 = vld [vmem:[#allocation2 + $0x3b8] sm:$0xff] }
 0x165   :  { %635 = vmatpush.msra.mxu1 %v318_v18  ;;  %616 = vmatpush.msra.mxu0 %v250_v21  ;;  %v286_v52 = vld [vmem:[#allocation2 + $0x428] sm:$0xff]  ;;  %v336_v5 = vld [vmem:[#allocation2 + $0x5b8] sm:$0xff]  ;;  %v255_v12 = vld [vmem:[#allocation2 + $0x330] sm:$0xff] }
 0x166   :  { %579 = vmatpush.msrb.mxu2 %v237_v15  ;;  %599 = vmatpush.msrb.mxu3 %v301_v16  ;;  %v218_v55 = vld [vmem:[#allocation2 + $0x208] sm:$0xff]  ;;  %v319_v6 = vld [vmem:[#allocation2 + $0x530] sm:$0xff]  ;;  %v268_v7 = vld [vmem:[#allocation2 + $0x398] sm:$0xff] }
 0x167   :  { %636 = vmatpush.msra.mxu1 %v314_v22  ;;  %617 = vmatpush.msra.mxu0 %v246_v25  ;;  %v282_v56 = vld [vmem:[#allocation2 + $0x408] sm:$0xff]  ;;  %v332_v9 = vld [vmem:[#allocation2 + $0x598] sm:$0xff]  ;;  %v251_v10 = vld [vmem:[#allocation2 + $0x310] sm:$0xff] }
 0x168   :  { %580 = vmatpush.msrb.mxu2 %v233_v19  ;;  %600 = vmatpush.msrb.mxu3 %v297_v20  ;;  %v315_v11 = vld [vmem:[#allocation2 + $0x510] sm:$0xff]  ;;  %v264_v13 = vld [vmem:[#allocation2 + $0x378] sm:$0xff] }
 0x169   :  { %637 = vmatpush.msra.mxu1 %v310_v27  ;;  %618 = vmatpush.msra.mxu0 %v242_v30  ;;  %v328_v14 = vld [vmem:[#allocation2 + $0x578] sm:$0xff]  ;;  %v247_v15 = vld [vmem:[#allocation2 + $0x2f0] sm:$0xff] }
 0x16a   :  { %581 = vmatpush.msrb.mxu2 %v229_v23  ;;  %601 = vmatpush.msrb.mxu3 %v293_v24  ;;  %v311_v16 = vld [vmem:[#allocation2 + $0x4f0] sm:$0xff]  ;;  %v260_v17 = vld [vmem:[#allocation2 + $0x358] sm:$0xff] }
 0x16b   :  { %638 = vmatpush.msra.mxu1 %v306_v31  ;;  %619 = vmatpush.msra.mxu0 %v238_v34  ;;  %v324_v18 = vld [vmem:[#allocation2 + $0x558] sm:$0xff]  ;;  %v243_v19 = vld [vmem:[#allocation2 + $0x2d0] sm:$0xff] }
 0x16c   :  { %582 = vmatpush.msrb.mxu2 %v225_v28  ;;  %602 = vmatpush.msrb.mxu3 %v289_v29  ;;  %v307_v20 = vld [vmem:[#allocation2 + $0x4d0] sm:$0xff]  ;;  %v256_v21 = vld [vmem:[#allocation2 + $0x338] sm:$0xff] }
 0x16d   :  { %639 = vmatpush.msra.mxu1 %v302_v36  ;;  %620 = vmatpush.msra.mxu0 %v234_v39  ;;  %v320_v22 = vld [vmem:[#allocation2 + $0x538] sm:$0xff]  ;;  %v239_v23 = vld [vmem:[#allocation2 + $0x2b0] sm:$0xff] }
 0x16e   :  { %583 = vmatpush.msrb.mxu2 %v221_v32  ;;  %603 = vmatpush.msrb.mxu3 %v285_v33  ;;  %v303_v24 = vld [vmem:[#allocation2 + $0x4b0] sm:$0xff]  ;;  %v252_v25 = vld [vmem:[#allocation2 + $0x318] sm:$0xff] }
 0x16f   :  { %640 = vmatpush.msra.mxu1 %v298_v40  ;;  %621 = vmatpush.msra.mxu0 %v230_v43  ;;  %v316_v27 = vld [vmem:[#allocation2 + $0x518] sm:$0xff]  ;;  %v235_v28 = vld [vmem:[#allocation2 + $0x290] sm:$0xff] }
 0x170   :  { %584 = vmatpush.msrb.mxu2 %v217_v37  ;;  %604 = vmatpush.msrb.mxu3 %v281_v38  ;;  %v299_v29 = vld [vmem:[#allocation2 + $0x490] sm:$0xff]  ;;  %v248_v30 = vld [vmem:[#allocation2 + $0x2f8] sm:$0xff] }
 0x171   :  { %641 = vmatpush.msra.mxu1 %v294_v44  ;;  %622 = vmatpush.msra.mxu0 %v226_v47  ;;  %v312_v31 = vld [vmem:[#allocation2 + $0x4f8] sm:$0xff]  ;;  %v231_v32 = vld [vmem:[#allocation2 + $0x270] sm:$0xff] }
 0x172   :  { %649 = vmatpush.msra.mxu2 %v279_v41  ;;  %669 = vmatpush.msra.mxu3 %v343_v42  ;;  %v295_v33 = vld [vmem:[#allocation2 + $0x470] sm:$0xff]  ;;  %v244_v34 = vld [vmem:[#allocation2 + $0x2d8] sm:$0xff] }
 0x173   :  { %642 = vmatpush.msra.mxu1 %v290_v48  ;;  %623 = vmatpush.msra.mxu0 %v222_v51  ;;  %v308_v36 = vld [vmem:[#allocation2 + $0x4d8] sm:$0xff]  ;;  %v227_v37 = vld [vmem:[#allocation2 + $0x250] sm:$0xff] }
 0x174   :  { %650 = vmatpush.msra.mxu2 %v275_v45  ;;  %670 = vmatpush.msra.mxu3 %v339_v46  ;;  %v291_v38 = vld [vmem:[#allocation2 + $0x450] sm:$0xff]  ;;  %v240_v39 = vld [vmem:[#allocation2 + $0x2b8] sm:$0xff] }
 0x175   :  { %643 = vmatpush.msra.mxu1 %v286_v52  ;;  %624 = vmatpush.msra.mxu0 %v218_v55  ;;  %v304_v40 = vld [vmem:[#allocation2 + $0x4b8] sm:$0xff]  ;;  %v223_v47 = vld [vmem:[#allocation2 + $0x230] sm:$0xff]  ;;  %v481_v55 = vperm.slane %v1192_v8, 1 }
 0x176   :  { %651 = vmatpush.msra.mxu2 %v271_v49  ;;  %671 = vmatpush.msra.mxu3 %v335_v50  ;;  %v236_v41 = vld [vmem:[#allocation2 + $0x298] sm:$0xff]  ;;  %v287_v48 = vld [vmem:[#allocation2 + $0x430] sm:$0xff] }
 0x177   :  { %644 = vmatpush.msra.mxu1 %v282_v56  ;;  %689 = vmatpush.msrb.mxu0 %v280_v57  ;;  %v300_v42 = vld [vmem:[#allocation2 + $0x498] sm:$0xff]  ;;  %v219_v51 = vld [vmem:[#allocation2 + $0x210] sm:$0xff]  ;;  %v482_v56 = vperm.slane %v1185_v0, 1 }
 0x178   :  { %652 = vmatpush.msra.mxu2 %v267_v53  ;;  %672 = vmatpush.msra.mxu3 %v331_v54  ;;  %v232_v43 = vld [vmem:[#allocation2 + $0x278] sm:$0xff]  ;;  %v283_v52 = vld [vmem:[#allocation2 + $0x410] sm:$0xff] }
 0x179   :  { %709 = vmatpush.msrb.mxu1 %v344_v58  ;;  %690 = vmatpush.msrb.mxu0 %v276_v61  ;;  %v296_v44 = vld [vmem:[#allocation2 + $0x478] sm:$0xff]  ;;  %v405_v61 = vld [vmem:[#allocation2 + $0x7e0] sm:$0xff] }
 0x17a   :  { %653 = vmatpush.msra.mxu2 %v263_v59  ;;  %673 = vmatpush.msra.mxu3 %v327_v60  ;;  %v228_v45 = vld [vmem:[#allocation2 + $0x258] sm:$0xff] }
 0x17b   :  { %710 = vmatpush.msrb.mxu1 %v340_v62  ;;  %691 = vmatpush.msrb.mxu0 %v272_v4  ;;  %v292_v46 = vld [vmem:[#allocation2 + $0x458] sm:$0xff]  ;;  %v469_v62 = vld [vmem:[#allocation2 + $0x9e0] sm:$0xff] }
 0x17c   :  { %654 = vmatpush.msra.mxu2 %v259_v63  ;;  %674 = vmatpush.msra.mxu3 %v323_v3  ;;  %v224_v49 = vld [vmem:[#allocation2 + $0x238] sm:$0xff]  ;;  %v406_v63 = vld [vmem:[#allocation2 + $0x7e8] sm:$0xff]  ;;  %v401_v4 = vld [vmem:[#allocation2 + $0x7c0] sm:$0xff] }
 0x17d   :  { %711 = vmatpush.msrb.mxu1 %v336_v5  ;;  %692 = vmatpush.msrb.mxu0 %v268_v7  ;;  %v288_v50 = vld [vmem:[#allocation2 + $0x438] sm:$0xff]  ;;  %v470_v3 = vld [vmem:[#allocation2 + $0x9e8] sm:$0xff]  ;;  %v465_v5 = vld [vmem:[#allocation2 + $0x9c0] sm:$0xff] }
 0x17e   :  { %655 = vmatpush.msra.mxu2 %v255_v12  ;;  %675 = vmatpush.msra.mxu3 %v319_v6  ;;  %v220_v53 = vld [vmem:[#allocation2 + $0x218] sm:$0xff]  ;;  %v402_v12 = vld [vmem:[#allocation2 + $0x7c8] sm:$0xff]  ;;  %v397_v7 = vld [vmem:[#allocation2 + $0x7a0] sm:$0xff] }
 0x17f   :  { %712 = vmatpush.msrb.mxu1 %v332_v9  ;;  %693 = vmatpush.msrb.mxu0 %v264_v13  ;;  %v284_v54 = vld [vmem:[#allocation2 + $0x418] sm:$0xff]  ;;  %v466_v6 = vld [vmem:[#allocation2 + $0x9c8] sm:$0xff]  ;;  %v461_v9 = vld [vmem:[#allocation2 + $0x9a0] sm:$0xff] }
 0x180   :  { %656 = vmatpush.msra.mxu2 %v251_v10  ;;  %676 = vmatpush.msra.mxu3 %v315_v11  ;;  %v398_v10 = vld [vmem:[#allocation2 + $0x7a8] sm:$0xff]  ;;  %v393_v13 = vld [vmem:[#allocation2 + $0x780] sm:$0xff] }
 0x181   :  { %713 = vmatpush.msrb.mxu1 %v328_v14  ;;  %694 = vmatpush.msrb.mxu0 %v260_v17  ;;  %v462_v11 = vld [vmem:[#allocation2 + $0x9a8] sm:$0xff]  ;;  %v457_v14 = vld [vmem:[#allocation2 + $0x980] sm:$0xff] }
 0x182   :  { %657 = vmatpush.msra.mxu2 %v247_v15  ;;  %677 = vmatpush.msra.mxu3 %v311_v16  ;;  %v394_v15 = vld [vmem:[#allocation2 + $0x788] sm:$0xff]  ;;  %v389_v17 = vld [vmem:[#allocation2 + $0x760] sm:$0xff] }
 0x183   :  { %714 = vmatpush.msrb.mxu1 %v324_v18  ;;  %695 = vmatpush.msrb.mxu0 %v256_v21  ;;  %v458_v16 = vld [vmem:[#allocation2 + $0x988] sm:$0xff]  ;;  %v453_v18 = vld [vmem:[#allocation2 + $0x960] sm:$0xff] }
 0x184   :  { %658 = vmatpush.msra.mxu2 %v243_v19  ;;  %678 = vmatpush.msra.mxu3 %v307_v20  ;;  %v390_v19 = vld [vmem:[#allocation2 + $0x768] sm:$0xff]  ;;  %v385_v21 = vld [vmem:[#allocation2 + $0x740] sm:$0xff] }
 0x185   :  { %715 = vmatpush.msrb.mxu1 %v320_v22  ;;  %696 = vmatpush.msrb.mxu0 %v252_v25  ;;  %v454_v20 = vld [vmem:[#allocation2 + $0x968] sm:$0xff]  ;;  %v449_v22 = vld [vmem:[#allocation2 + $0x940] sm:$0xff] }
 0x186   :  { %659 = vmatpush.msra.mxu2 %v239_v23  ;;  %679 = vmatpush.msra.mxu3 %v303_v24  ;;  %v386_v23 = vld [vmem:[#allocation2 + $0x748] sm:$0xff]  ;;  %v381_v25 = vld [vmem:[#allocation2 + $0x720] sm:$0xff] }
 0x187   :  { %716 = vmatpush.msrb.mxu1 %v316_v27  ;;  %697 = vmatpush.msrb.mxu0 %v248_v30  ;;  %v450_v24 = vld [vmem:[#allocation2 + $0x948] sm:$0xff]  ;;  %v445_v27 = vld [vmem:[#allocation2 + $0x920] sm:$0xff] }
 0x188   :  { %660 = vmatpush.msra.mxu2 %v235_v28  ;;  %680 = vmatpush.msra.mxu3 %v299_v29  ;;  %v382_v28 = vld [vmem:[#allocation2 + $0x728] sm:$0xff]  ;;  %v377_v30 = vld [vmem:[#allocation2 + $0x700] sm:$0xff] }
 0x189   :  { %717 = vmatpush.msrb.mxu1 %v312_v31  ;;  %698 = vmatpush.msrb.mxu0 %v244_v34  ;;  %v446_v29 = vld [vmem:[#allocation2 + $0x928] sm:$0xff]  ;;  %v441_v31 = vld [vmem:[#allocation2 + $0x900] sm:$0xff] }
 0x18a   :  { %661 = vmatpush.msra.mxu2 %v231_v32  ;;  %681 = vmatpush.msra.mxu3 %v295_v33  ;;  %v378_v32 = vld [vmem:[#allocation2 + $0x708] sm:$0xff]  ;;  %v373_v34 = vld [vmem:[#allocation2 + $0x6e0] sm:$0xff] }
 0x18b   :  { %718 = vmatpush.msrb.mxu1 %v308_v36  ;;  %699 = vmatpush.msrb.mxu0 %v240_v39  ;;  %v442_v33 = vld [vmem:[#allocation2 + $0x908] sm:$0xff]  ;;  %v437_v36 = vld [vmem:[#allocation2 + $0x8e0] sm:$0xff] }
 0x18c   :  { %662 = vmatpush.msra.mxu2 %v227_v37  ;;  %682 = vmatpush.msra.mxu3 %v291_v38  ;;  %v374_v37 = vld [vmem:[#allocation2 + $0x6e8] sm:$0xff]  ;;  %v369_v39 = vld [vmem:[#allocation2 + $0x6c0] sm:$0xff] }
 0x18d   :  { %719 = vmatpush.msrb.mxu1 %v304_v40  ;;  %700 = vmatpush.msrb.mxu0 %v236_v41  ;;  %v438_v38 = vld [vmem:[#allocation2 + $0x8e8] sm:$0xff]  ;;  %v433_v40 = vld [vmem:[#allocation2 + $0x8c0] sm:$0xff] }
 0x18e   :  { %663 = vmatpush.msra.mxu2 %v223_v47  ;;  %683 = vmatpush.msra.mxu3 %v287_v48  ;;  %v370_v41 = vld [vmem:[#allocation2 + $0x6c8] sm:$0xff]  ;;  %v361_v47 = vld [vmem:[#allocation2 + $0x680] sm:$0xff] }
 0x18f   :  { %720 = vmatpush.msrb.mxu1 %v300_v42  ;;  %701 = vmatpush.msrb.mxu0 %v232_v43  ;;  %v434_v42 = vld [vmem:[#allocation2 + $0x8c8] sm:$0xff]  ;;  %v365_v43 = vld [vmem:[#allocation2 + $0x6a0] sm:$0xff] }
 0x190   :  { %664 = vmatpush.msra.mxu2 %v219_v51  ;;  %684 = vmatpush.msra.mxu3 %v283_v52  ;;  %v425_v48 = vld [vmem:[#allocation2 + $0x880] sm:$0xff] }
 0x191   :  { %721 = vmatpush.msrb.mxu1 %v296_v44  ;;  %702 = vmatpush.msrb.mxu0 %v228_v45  ;;  %v429_v44 = vld [vmem:[#allocation2 + $0x8a0] sm:$0xff]  ;;  %v366_v45 = vld [vmem:[#allocation2 + $0x6a8] sm:$0xff] }
 0x192   :  { %v357_v51 = vld [vmem:[#allocation2 + $0x660] sm:$0xff] }
 0x193   :  { %722 = vmatpush.msrb.mxu1 %v292_v46  ;;  %703 = vmatpush.msrb.mxu0 %v224_v49  ;;  %v430_v46 = vld [vmem:[#allocation2 + $0x8a8] sm:$0xff]  ;;  %v421_v52 = vld [vmem:[#allocation2 + $0x860] sm:$0xff] }
 0x194   :  { %v362_v49 = vld [vmem:[#allocation2 + $0x688] sm:$0xff] }
 0x195   :  { %723 = vmatpush.msrb.mxu1 %v288_v50  ;;  %704 = vmatpush.msrb.mxu0 %v220_v53  ;;  %v426_v50 = vld [vmem:[#allocation2 + $0x888] sm:$0xff] }
 0x196   :  { %v358_v53 = vld [vmem:[#allocation2 + $0x668] sm:$0xff] }
 0x197   :  { %724 = vmatpush.msrb.mxu1 %v284_v54  ;;  %v422_v54 = vld [vmem:[#allocation2 + $0x868] sm:$0xff] }
 0x1d4   :  { %v502_v57 = vpop.f32.mrf.mxu2  ;;  %v522_v58 = vpop.f32.mrf.mxu3 }
 0x1d5   :  { %v503_v59 = vadd.f32 %v502_v57, %v481_v55  ;;  %v523_v60 = vadd.f32 %v522_v58, %v482_v56  ;;  %v353_v55 = vld [vmem:[#allocation2 + $0x640] sm:$0xff]  ;;  %v354_v57 = vld [vmem:[#allocation2 + $0x648] sm:$0xff] }
 0x1d6   :  { %v417_v56 = vld [vmem:[#allocation2 + $0x840] sm:$0xff]  ;;  %v418_v58 = vld [vmem:[#allocation2 + $0x848] sm:$0xff] }
 0x1d7   :  { %585 = vmatmul.f32.vlgmr.msrb.gmra.mxu2 %v503_v59  ;;  %605 = vmatmul.f32.vlgmr.msrb.gmra.mxu3 %v523_v60 }
 0x1d8   :  { %625 = vmatmul.f32.vlgmr.msra.gmra.mxu0 %v503_v59  ;;  %645 = vmatmul.f32.vlgmr.msra.gmra.mxu1 %v523_v60 }
 0x1d9   :  { %737 = vmatpush.msrb.mxu2 %v405_v61  ;;  %757 = vmatpush.msrb.mxu3 %v469_v62  ;;  %v350_v61 = vld [vmem:[#allocation2 + $0x628] sm:$0xff] }
 0x1da   :  { %777 = vmatpush.msra.mxu0 %v406_v63  ;;  %797 = vmatpush.msra.mxu1 %v470_v3  ;;  %v414_v62 = vld [vmem:[#allocation2 + $0x828] sm:$0xff]  ;;  %v345_v63 = vld [vmem:[#allocation2 + $0x600] sm:$0xff] }
 0x1db   :  { %738 = vmatpush.msrb.mxu2 %v401_v4  ;;  %758 = vmatpush.msrb.mxu3 %v465_v5  ;;  %v409_v3 = vld [vmem:[#allocation2 + $0x800] sm:$0xff]  ;;  %v346_v4 = vld [vmem:[#allocation2 + $0x608] sm:$0xff] }
 0x1dc   :  { %778 = vmatpush.msra.mxu0 %v402_v12  ;;  %798 = vmatpush.msra.mxu1 %v466_v6  ;;  %v410_v5 = vld [vmem:[#allocation2 + $0x808] sm:$0xff]  ;;  %v407_v12 = vld [vmem:[#allocation2 + $0x7f0] sm:$0xff] }
 0x1dd   :  { %739 = vmatpush.msrb.mxu2 %v397_v7  ;;  %759 = vmatpush.msrb.mxu3 %v461_v9  ;;  %v471_v6 = vld [vmem:[#allocation2 + $0x9f0] sm:$0xff]  ;;  %v408_v7 = vld [vmem:[#allocation2 + $0x7f8] sm:$0xff] }
 0x1de   :  { %779 = vmatpush.msra.mxu0 %v398_v10  ;;  %799 = vmatpush.msra.mxu1 %v462_v11  ;;  %v472_v9 = vld [vmem:[#allocation2 + $0x9f8] sm:$0xff]  ;;  %v403_v10 = vld [vmem:[#allocation2 + $0x7d0] sm:$0xff] }
 0x1df   :  { %740 = vmatpush.msrb.mxu2 %v393_v13  ;;  %760 = vmatpush.msrb.mxu3 %v457_v14  ;;  %v467_v11 = vld [vmem:[#allocation2 + $0x9d0] sm:$0xff]  ;;  %v404_v13 = vld [vmem:[#allocation2 + $0x7d8] sm:$0xff] }
 0x1e0   :  { %780 = vmatpush.msra.mxu0 %v394_v15  ;;  %800 = vmatpush.msra.mxu1 %v458_v16  ;;  %v468_v14 = vld [vmem:[#allocation2 + $0x9d8] sm:$0xff]  ;;  %v399_v15 = vld [vmem:[#allocation2 + $0x7b0] sm:$0xff] }
 0x1e1   :  { %665 = vmatmul.f32.vlgmr.msra.gmra.mxu2 %v503_v59  ;;  %685 = vmatmul.f32.vlgmr.msra.gmra.mxu3 %v523_v60  ;;  %v463_v16 = vld [vmem:[#allocation2 + $0x9b0] sm:$0xff] }
 0x1e2   :  { %705 = vmatmul.f32.vlgmr.msrb.gmra.mxu0 %v503_v59  ;;  %725 = vmatmul.f32.vlgmr.msrb.gmra.mxu1 %v523_v60  ;;  %v349_v59 = vld [vmem:[#allocation2 + $0x620] sm:$0xff] }
 0x1e3   :  { %741 = vmatpush.msrb.mxu2 %v389_v17  ;;  %761 = vmatpush.msrb.mxu3 %v453_v18  ;;  %v413_v60 = vld [vmem:[#allocation2 + $0x820] sm:$0xff]  ;;  %v400_v17 = vld [vmem:[#allocation2 + $0x7b8] sm:$0xff] }
 0x1e4   :  { %781 = vmatpush.msra.mxu0 %v390_v19  ;;  %801 = vmatpush.msra.mxu1 %v454_v20  ;;  %v464_v18 = vld [vmem:[#allocation2 + $0x9b8] sm:$0xff]  ;;  %v395_v19 = vld [vmem:[#allocation2 + $0x790] sm:$0xff] }
 0x1e5   :  { %742 = vmatpush.msrb.mxu2 %v385_v21  ;;  %762 = vmatpush.msrb.mxu3 %v449_v22  ;;  %v459_v20 = vld [vmem:[#allocation2 + $0x990] sm:$0xff]  ;;  %v396_v21 = vld [vmem:[#allocation2 + $0x798] sm:$0xff] }
 0x1e6   :  { %782 = vmatpush.msra.mxu0 %v386_v23  ;;  %802 = vmatpush.msra.mxu1 %v450_v24  ;;  %v460_v22 = vld [vmem:[#allocation2 + $0x998] sm:$0xff]  ;;  %v391_v23 = vld [vmem:[#allocation2 + $0x770] sm:$0xff] }
 0x1e7   :  { %743 = vmatpush.msrb.mxu2 %v381_v25  ;;  %763 = vmatpush.msrb.mxu3 %v445_v27  ;;  %v455_v24 = vld [vmem:[#allocation2 + $0x970] sm:$0xff]  ;;  %v392_v25 = vld [vmem:[#allocation2 + $0x778] sm:$0xff] }
 0x1e8   :  { %783 = vmatpush.msra.mxu0 %v382_v28  ;;  %803 = vmatpush.msra.mxu1 %v446_v29  ;;  %v456_v27 = vld [vmem:[#allocation2 + $0x978] sm:$0xff]  ;;  %v483_v28 = vperm.slane %v1187_v1, 1  ;;  %v542_v29 = vpop.f32.mrf.mxu0 }
 0x1e9   :  { %744 = vmatpush.msrb.mxu2 %v377_v30  ;;  %764 = vmatpush.msrb.mxu3 %v441_v31  ;;  %v387_v30 = vld [vmem:[#allocation2 + $0x750] sm:$0xff] }
 0x1ea   :  { %784 = vmatpush.msra.mxu0 %v378_v32  ;;  %804 = vmatpush.msra.mxu1 %v442_v33  ;;  %v451_v31 = vld [vmem:[#allocation2 + $0x950] sm:$0xff]  ;;  %v388_v32 = vld [vmem:[#allocation2 + $0x758] sm:$0xff] }
 0x1eb   :  { %745 = vmatpush.msrb.mxu2 %v373_v34  ;;  %765 = vmatpush.msrb.mxu3 %v437_v36  ;;  %v452_v33 = vld [vmem:[#allocation2 + $0x958] sm:$0xff]  ;;  %v484_v34 = vperm.slane %v1189_v2, 1  ;;  %v562_v36 = vpop.f32.mrf.mxu1 }
 0x1ec   :  { %785 = vmatpush.msra.mxu0 %v374_v37  ;;  %805 = vmatpush.msra.mxu1 %v438_v38  ;;  %v383_v37 = vld [vmem:[#allocation2 + $0x730] sm:$0xff] }
 0x1ed   :  { %746 = vmatpush.msrb.mxu2 %v369_v39  ;;  %766 = vmatpush.msrb.mxu3 %v433_v40  ;;  %v447_v38 = vld [vmem:[#allocation2 + $0x930] sm:$0xff]  ;;  %v1214_v39 = vadd.f32 %v542_v29, %v483_v28  ;;  %v384_v40 = vld [vmem:[#allocation2 + $0x738] sm:$0xff]  ;;  %v566_v28 = vperm.slane %v1185_v0, 2 }
 0x1ee   :  { %786 = vmatpush.msra.mxu0 %v370_v41  ;;  %806 = vmatpush.msra.mxu1 %v434_v42  ;;  %v448_v41 = vld [vmem:[#allocation2 + $0x938] sm:$0xff]  ;;  %v443_v42 = vld [vmem:[#allocation2 + $0x910] sm:$0xff] }
 0x1ef   :  { %747 = vmatpush.msrb.mxu2 %v365_v43  ;;  %767 = vmatpush.msrb.mxu3 %v429_v44  ;;  %v1216_v43 = vadd.f32 %v562_v36, %v484_v34  ;;  %v379_v44 = vld [vmem:[#allocation2 + $0x710] sm:$0xff] }
 0x1f0   :  { %787 = vmatpush.msra.mxu0 %v366_v45  ;;  %807 = vmatpush.msra.mxu1 %v430_v46  ;;  %v380_v45 = vld [vmem:[#allocation2 + $0x718] sm:$0xff] }
 0x1f1   :  { %748 = vmatpush.msrb.mxu2 %v361_v47  ;;  %768 = vmatpush.msrb.mxu3 %v425_v48  ;;  %v444_v46 = vld [vmem:[#allocation2 + $0x918] sm:$0xff]  ;;  %v375_v47 = vld [vmem:[#allocation2 + $0x6f0] sm:$0xff] }
 0x1f2   :  { %788 = vmatpush.msra.mxu0 %v362_v49  ;;  %808 = vmatpush.msra.mxu1 %v426_v50  ;;  %v439_v48 = vld [vmem:[#allocation2 + $0x8f0] sm:$0xff]  ;;  %v376_v49 = vld [vmem:[#allocation2 + $0x6f8] sm:$0xff] }
 0x1f3   :  { %749 = vmatpush.msrb.mxu2 %v357_v51  ;;  %769 = vmatpush.msrb.mxu3 %v421_v52  ;;  %v440_v50 = vld [vmem:[#allocation2 + $0x8f8] sm:$0xff]  ;;  %v371_v51 = vld [vmem:[#allocation2 + $0x6d0] sm:$0xff] }
 0x1f4   :  { %789 = vmatpush.msra.mxu0 %v358_v53  ;;  %809 = vmatpush.msra.mxu1 %v422_v54  ;;  %v435_v52 = vld [vmem:[#allocation2 + $0x8d0] sm:$0xff]  ;;  %v372_v53 = vld [vmem:[#allocation2 + $0x6d8] sm:$0xff] }
 0x1f5   :  { %750 = vmatpush.msrb.mxu2 %v353_v55  ;;  %770 = vmatpush.msrb.mxu3 %v417_v56  ;;  %v436_v54 = vld [vmem:[#allocation2 + $0x8d8] sm:$0xff]  ;;  %v367_v55 = vld [vmem:[#allocation2 + $0x6b0] sm:$0xff] }
 0x1f6   :  { %790 = vmatpush.msra.mxu0 %v354_v57  ;;  %810 = vmatpush.msra.mxu1 %v418_v58  ;;  %v431_v56 = vld [vmem:[#allocation2 + $0x8b0] sm:$0xff]  ;;  %v368_v57 = vld [vmem:[#allocation2 + $0x6b8] sm:$0xff] }
 0x1f7   :  { %751 = vmatpush.msrb.mxu2 %v349_v59  ;;  %771 = vmatpush.msrb.mxu3 %v413_v60  ;;  %v432_v58 = vld [vmem:[#allocation2 + $0x8b8] sm:$0xff]  ;;  %v363_v59 = vld [vmem:[#allocation2 + $0x690] sm:$0xff] }
 0x1f8   :  { %791 = vmatpush.msra.mxu0 %v350_v61  ;;  %811 = vmatpush.msra.mxu1 %v414_v62  ;;  %v427_v60 = vld [vmem:[#allocation2 + $0x890] sm:$0xff]  ;;  %v364_v61 = vld [vmem:[#allocation2 + $0x698] sm:$0xff] }
 0x1f9   :  { %752 = vmatpush.msrb.mxu2 %v345_v63  ;;  %772 = vmatpush.msrb.mxu3 %v409_v3  ;;  %v428_v62 = vld [vmem:[#allocation2 + $0x898] sm:$0xff]  ;;  %v359_v63 = vld [vmem:[#allocation2 + $0x670] sm:$0xff] }
 0x1fa   :  { %792 = vmatpush.msra.mxu0 %v346_v4  ;;  %812 = vmatpush.msra.mxu1 %v410_v5  ;;  %v423_v3 = vld [vmem:[#allocation2 + $0x870] sm:$0xff]  ;;  %v360_v4 = vld [vmem:[#allocation2 + $0x678] sm:$0xff] }
 0x1fb   :  { %817 = vmatpush.msra.mxu2 %v407_v12  ;;  %837 = vmatpush.msra.mxu3 %v471_v6  ;;  %v424_v5 = vld [vmem:[#allocation2 + $0x878] sm:$0xff]  ;;  %v355_v12 = vld [vmem:[#allocation2 + $0x650] sm:$0xff] }
 0x1fc   :  { %857 = vmatpush.msrb.mxu0 %v408_v7  ;;  %877 = vmatpush.msrb.mxu1 %v472_v9  ;;  %v419_v6 = vld [vmem:[#allocation2 + $0x850] sm:$0xff]  ;;  %v356_v7 = vld [vmem:[#allocation2 + $0x658] sm:$0xff] }
 0x1fd   :  { %818 = vmatpush.msra.mxu2 %v403_v10  ;;  %838 = vmatpush.msra.mxu3 %v467_v11  ;;  %v420_v9 = vld [vmem:[#allocation2 + $0x858] sm:$0xff]  ;;  %v351_v10 = vld [vmem:[#allocation2 + $0x630] sm:$0xff] }
 0x1fe   :  { %858 = vmatpush.msrb.mxu0 %v404_v13  ;;  %878 = vmatpush.msrb.mxu1 %v468_v14  ;;  %v415_v11 = vld [vmem:[#allocation2 + $0x830] sm:$0xff]  ;;  %v352_v13 = vld [vmem:[#allocation2 + $0x638] sm:$0xff] }
 0x1ff   :  { %819 = vmatpush.msra.mxu2 %v399_v15  ;;  %839 = vmatpush.msra.mxu3 %v463_v16  ;;  %v416_v14 = vld [vmem:[#allocation2 + $0x838] sm:$0xff]  ;;  %v347_v15 = vld [vmem:[#allocation2 + $0x610] sm:$0xff] }
 0x200   :  { %859 = vmatpush.msrb.mxu0 %v400_v17  ;;  %879 = vmatpush.msrb.mxu1 %v464_v18  ;;  %v411_v16 = vld [vmem:[#allocation2 + $0x810] sm:$0xff]  ;;  %v348_v17 = vld [vmem:[#allocation2 + $0x618] sm:$0xff] }
 0x201   :  { %820 = vmatpush.msra.mxu2 %v395_v19  ;;  %840 = vmatpush.msra.mxu3 %v459_v20  ;;  %v412_v18 = vld [vmem:[#allocation2 + $0x818] sm:$0xff]  ;;  %v478_v19 = vld [vmem:[#allocation2 + $0xa28] sm:$0xff] }
 0x202   :  { %860 = vmatpush.msrb.mxu0 %v396_v21  ;;  %880 = vmatpush.msrb.mxu1 %v460_v22  ;;  %v474_v20 = vld [vmem:[#allocation2 + $0xa08] sm:$0xff]  ;;  %v477_v21 = vld [vmem:[#allocation2 + $0xa20] sm:$0xff]  ;;  %v480_v22 = vld [vmem:[#allocation2 + $0xa38] sm:$0xff] }
 0x203   :  { %821 = vmatpush.msra.mxu2 %v391_v23  ;;  %841 = vmatpush.msra.mxu3 %v455_v24  ;;  %v473_v23 = vld [vmem:[#allocation2 + $0xa00] sm:$0xff]  ;;  %v476_v24 = vld [vmem:[#allocation2 + $0xa18] sm:$0xff] }
 0x204   :  { %861 = vmatpush.msrb.mxu0 %v392_v25  ;;  %881 = vmatpush.msrb.mxu1 %v456_v27  ;;  %v479_v25 = vld [vmem:[#allocation2 + $0xa30] sm:$0xff] }
 0x205   :  { %822 = vmatpush.msra.mxu2 %v387_v30  ;;  %842 = vmatpush.msra.mxu3 %v451_v31  ;;  %v475_v27 = vld [vmem:[#allocation2 + $0xa10] sm:$0xff] }
 0x206   :  { %862 = vmatpush.msrb.mxu0 %v388_v32  ;;  %882 = vmatpush.msrb.mxu1 %v452_v33  ;;  %v565_v32 = vperm.slane %v1192_v8, 2 }
 0x207   :  { %823 = vmatpush.msra.mxu2 %v383_v37  ;;  %843 = vmatpush.msra.mxu3 %v447_v38  ;;  %v568_v38 = vperm.slane %v1189_v2, 2 }
 0x208   :  { %863 = vmatpush.msrb.mxu0 %v384_v40  ;;  %883 = vmatpush.msrb.mxu1 %v448_v41 }
 0x209   :  { %753 = vmatmul.f32.vlgmr.msrb.gmra.mxu2 %v1214_v39  ;;  %844 = vmatpush.msra.mxu3 %v443_v42 }
 0x20a   :  { %824 = vmatpush.msra.mxu2 %v379_v44  ;;  %864 = vmatpush.msrb.mxu0 %v380_v45  ;;  %v567_v44 = vperm.slane %v1187_v1, 2 }
 0x20b   :  { %884 = vmatpush.msrb.mxu1 %v444_v46  ;;  %773 = vmatmul.f32.vlgmr.msrb.gmra.mxu3 %v1216_v43 }
 0x20c   :  { %825 = vmatpush.msra.mxu2 %v375_v47  ;;  %845 = vmatpush.msra.mxu3 %v439_v48 }
 0x20d   :  { %865 = vmatpush.msrb.mxu0 %v376_v49  ;;  %885 = vmatpush.msrb.mxu1 %v440_v50 }
 0x20e   :  { %826 = vmatpush.msra.mxu2 %v371_v51  ;;  %846 = vmatpush.msra.mxu3 %v435_v52 }
 0x20f   :  { %866 = vmatpush.msrb.mxu0 %v372_v53  ;;  %886 = vmatpush.msrb.mxu1 %v436_v54  ;;  %v733_v53 = vperm.slane %v1192_v8, 3 }
 0x210   :  { %827 = vmatpush.msra.mxu2 %v367_v55  ;;  %847 = vmatpush.msra.mxu3 %v431_v56  ;;  %v734_v55 = vperm.slane %v1185_v0, 3  ;;  %v735_v0 = vperm.slane %v1187_v1, 3 }
 0x211   :  { %867 = vmatpush.msrb.mxu0 %v368_v57  ;;  %887 = vmatpush.msrb.mxu1 %v432_v58 }
 0x212   :  { %793 = vmatmul.f32.vlgmr.msra.gmra.mxu0 %v1214_v39  ;;  %828 = vmatpush.msra.mxu2 %v363_v59 }
 0x213   :  { %848 = vmatpush.msra.mxu3 %v427_v60  ;;  %868 = vmatpush.msrb.mxu0 %v364_v61 }
 0x214   :  { %888 = vmatpush.msrb.mxu1 %v428_v62  ;;  %829 = vmatpush.msra.mxu2 %v359_v63 }
 0x215   :  { %813 = vmatmul.f32.vlgmr.msra.gmra.mxu1 %v1216_v43  ;;  %849 = vmatpush.msra.mxu3 %v423_v3  ;;  %v736_v3 = vperm.slane %v1189_v2, 3 }
 0x216   :  { %869 = vmatpush.msrb.mxu0 %v360_v4  ;;  %889 = vmatpush.msrb.mxu1 %v424_v5 }
 0x217   :  { %830 = vmatpush.msra.mxu2 %v355_v12  ;;  %850 = vmatpush.msra.mxu3 %v419_v6 }
 0x218   :  { %870 = vmatpush.msrb.mxu0 %v356_v7  ;;  %890 = vmatpush.msrb.mxu1 %v420_v9 }
 0x219   :  { %831 = vmatpush.msra.mxu2 %v351_v10  ;;  %851 = vmatpush.msra.mxu3 %v415_v11 }
 0x21a   :  { %871 = vmatpush.msrb.mxu0 %v352_v13  ;;  %891 = vmatpush.msrb.mxu1 %v416_v14 }
 0x21b   :  { %832 = vmatpush.msra.mxu2 %v347_v15  ;;  %852 = vmatpush.msra.mxu3 %v411_v16  ;;  %v901_v16 = vperm.slane %v1192_v8, 4 }
 0x21c   :  { %872 = vmatpush.msrb.mxu0 %v348_v17  ;;  %892 = vmatpush.msrb.mxu1 %v412_v18 }
 0x21d   :  { %833 = vmatmul.f32.vlgmr.msra.gmra.mxu2 %v1214_v39  ;;  %853 = vmatmul.f32.vlgmr.msra.gmra.mxu3 %v1216_v43 }
 0x21e   :  { %873 = vmatmul.f32.vlgmr.msrb.gmra.mxu0 %v1214_v39  ;;  %893 = vmatmul.f32.vlgmr.msrb.gmra.mxu1 %v1216_v43 }
 0x21f   :  { %939 = vmatpush.xpose.msrb.mxu3 %v478_v19  ;;  %916 = vmatpush.xpose.msrb.mxu2 %v477_v21 }
 0x220   :  { %985 = vmatpush.xpose.msra.mxu1 %v480_v22  ;;  %962 = vmatpush.xpose.msra.mxu0 %v479_v25 }
 0x223   :  { %940 = vmatpush.xpose.msrb.mxu3 %v474_v20  ;;  %917 = vmatpush.xpose.msrb.mxu2 %v473_v23 }
 0x224   :  { %986 = vmatpush.xpose.msra.mxu1 %v476_v24  ;;  %963 = vmatpush.xpose.msra.mxu0 %v475_v27 }
 0x255   :  { %v626_v29 = vpop.f32.mrf.mxu0  ;;  %v646_v31 = vpop.f32.mrf.mxu1 }
 0x256   :  { %v627_v30 = vadd.f32 %v626_v29, %v566_v28 }
 0x258   :  { %v647_v33 = vadd.f32 %v646_v31, %v627_v30 }
 0x25a   :  { %1027 = vtanh.f32 %v647_v33  ;;  %v586_v34 = vpop.f32.mrf.mxu2  ;;  %v606_v37 = vpop.f32.mrf.mxu3 }
 0x25b   :  { %v587_v36 = vadd.f32 %v586_v34, %v565_v32 }
 0x25d   :  { %v607_v39 = vadd.f32 %v606_v37, %v587_v36 }
 0x25f   :  { %1029 = vtanh.f32 %v607_v39  ;;  %v706_v40 = vpop.f32.mrf.mxu0  ;;  %v726_v43 = vpop.f32.mrf.mxu1 }
 0x260   :  { %v1028_v41 = vpop.eup %1027  ;;  %v707_v42 = vadd.f32 %v706_v40, %v568_v38 }
 0x261   :  { %941 = vmatmul.f32.vlgmr.msrb.gmra.mxu3 %v1028_v41 }
 0x262   :  { %v727_v45 = vadd.f32 %v726_v43, %v707_v42 }
 0x264   :  { %1031 = vtanh.f32 %v727_v45  ;;  %v666_v46 = vpop.f32.mrf.mxu2  ;;  %v686_v49 = vpop.f32.mrf.mxu3 }
 0x265   :  { %v1030_v47 = vpop.eup %1029  ;;  %v667_v48 = vadd.f32 %v666_v46, %v567_v44 }
 0x266   :  { %918 = vmatmul.f32.vlgmr.msrb.gmra.mxu2 %v1030_v47 }
 0x267   :  { %v687_v50 = vadd.f32 %v686_v49, %v667_v48 }
 0x269   :  { %1033 = vtanh.f32 %v687_v50 }
 0x26a   :  { %v1032_v51 = vpop.eup %1031 }
 0x26b   :  { %987 = vmatmul.f32.vlgmr.msra.gmra.mxu1 %v1032_v51 }
 0x26f   :  { %v1034_v52 = vpop.eup %1033 }
 0x270   :  { %964 = vmatmul.f32.vlgmr.msra.gmra.mxu0 %v1034_v52 }
 0x28c   :  { %v754_v54 = vpop.f32.mrf.mxu2 }
 0x28d   :  { %v755_v56 = vadd.f32 %v754_v54, %v733_v53 }
 0x28e   :  { %v774_v57 = vpop.f32.mrf.mxu3 }
 0x28f   :  { %v775_v58 = vadd.f32 %v774_v57, %v755_v56  ;;  %v794_v59 = vpop.f32.mrf.mxu0 }
 0x290   :  { %v795_v60 = vadd.f32 %v794_v59, %v734_v55 }
 0x291   :  { %1035 = vtanh.f32 %v775_v58 }
 0x292   :  { %v814_v61 = vpop.f32.mrf.mxu1 }
 0x293   :  { %v815_v62 = vadd.f32 %v814_v61, %v795_v60 }
 0x295   :  { %1037 = vtanh.f32 %v815_v62 }
 0x297   :  { %v1036_v63 = vpop.eup %1035 }
 0x298   :  { %921 = vmatmul.f32.gmra.mxu2 %v1036_v63 }
 0x29b   :  { %v1038_v4 = vpop.eup %1037  ;;  %v874_v5 = vpop.f32.mrf.mxu0 }
 0x29c   :  { %v875_v12 = vadd.f32 %v874_v5, %v736_v3  ;;  %944 = vmatmul.f32.gmra.mxu3 %v1038_v4  ;;  %v894_v6 = vpop.f32.mrf.mxu1 }
 0x29e   :  { %v895_v7 = vadd.f32 %v894_v6, %v875_v12 }
 0x2a0   :  { %1039 = vtanh.f32 %v895_v7  ;;  %v834_v9 = vpop.f32.mrf.mxu2  ;;  %v854_v11 = vpop.f32.mrf.mxu3 }
 0x2a1   :  { %v835_v10 = vadd.f32 %v834_v9, %v735_v0 }
 0x2a3   :  { %v855_v13 = vadd.f32 %v854_v11, %v835_v10 }
 0x2a5   :  { %1041 = vtanh.f32 %v855_v13 }
 0x2a6   :  { %v1040_v14 = vpop.eup %1039 }
 0x2a7   :  { %990 = vmatmul.f32.gmra.mxu1 %v1040_v14 }
 0x2ab   :  { %v1042_v15 = vpop.eup %1041 }
 0x2ac   :  { %967 = vmatmul.f32.gmra.mxu0 %v1042_v15 }
 0x2e4   :  { %v942_v17 = vpop.f32.mrf.mxu3 }
 0x2e8   :  { %v988_v21 = vpop.f32.mrf.mxu1 }
 0x2e9   :  { %v919_v2 = vpop.f32.mrf.mxu2 }
 0x2ea   :  { %v920_v18 = vadd.f32 %v919_v2, %v901_v16 }
 0x2ec   :  { %v943_v1 = vadd.f32 %v942_v17, %v920_v18 }
 0x2ed   :  { %v965_v19 = vpop.f32.mrf.mxu0 }
 0x2ee   :  { %v966_v24 = vadd.f32 %v965_v19, %v943_v1 }
 0x2f0   :  { %v989_v30 = vadd.f32 %v988_v21, %v966_v24 }
 0x31b   :  { %v922_v20 = vpop.f32.mrf.mxu2 }
 0x31c   :  { %v923_v22 = vadd.f32 %v922_v20, %v901_v16 }
 0x31f   :  { %v945_v23 = vpop.f32.mrf.mxu3 }
 0x320   :  { %v946_v25 = vadd.f32 %v945_v23, %v923_v22 }
 0x324   :  { %v991_v29 = vpop.f32.mrf.mxu1 }
 0x329   :  { %v968_v27 = vpop.f32.mrf.mxu0 }
 0x32a   :  { %v969_v28 = vadd.f32 %v968_v27, %v946_v25 }
 0x32c   :  { %v992_v31 = vadd.f32 %v991_v29, %v969_v28 }
 0x32e   :  { %v995_v8 = vsel %vm994_vm3, %v989_v30, %v992_v31 }
 0x32f   :  { %v997_v32 = vsel %vm996_vm4, %v995_v8, %v1204_v35 }
 0x330   :  { %998 = vst.msk [vmem:[%s1246_s4] sm:$0xff] %vm81_vm0, %v997_v32 }
 0x331   :  { %1003 = vsyncpa [#allocation5], 1 }
 0x332   :  { %1004 = vsyncpa [#allocation7], 1 }
 0x333   :  { %1005 = vsyncmov [#allocation3] }
 0x336   :  { %s1006_s9 = vpop.sfrf %1005 }
 0x337   :  { %p1012_p0 = scmp.ne.s32.totalorder %s1006_s9, 0 }
 0x339   :  { %1010 = shalt.err (%p1012_p0)  }

</bundles_post_ra>
